<compile_context>
chip_gen: v6e
topology: v6e:2x2x1
jax: 0.10.0
libtpu: 0.0.40
codegen_flags: <defaults>
</compile_context>

<pallas_src>
import jax
import jax.numpy as jnp
from jax.experimental import pallas as pl
from jax.experimental.pallas import tpu as pltpu


# ---------------------------------------------------------------------------
# Pallas kernel: gate-weighted sum over experts of the Expert2 MLP.
# ---------------------------------------------------------------------------
def expert_moe_kernel(g_ref, x_ref, w1_ref, b1_ref, w2_ref, b2_ref, o_ref):
    e = pl.program_id(1)

    @pl.when(e == 0)
    def _init():
        o_ref[...] = jnp.zeros_like(o_ref)

    # fc1 (+ folded BatchNorm): bf16 MXU matmul with f32 accumulation.
    h = jnp.dot(x_ref[...], w1_ref[...], preferred_element_type=jnp.float32)
    h = jnp.maximum(h + b1_ref[...], 0.0)          # bias + ReLU in f32 (VPU)
    # Dropout(0.3) is identity in eval mode.

    # fc2: bf16 MXU matmul with f32 accumulation; bias add in f32.
    y = jnp.dot(h.astype(jnp.bfloat16), w2_ref[...],
                preferred_element_type=jnp.float32) + b2_ref[...]

    # Gate for this expert: select column `e` of the resident (tb, E) block.
    lane = jax.lax.broadcasted_iota(jnp.int32, g_ref.shape, 1)
    g = jnp.sum(jnp.where(lane == e, g_ref[...], 0.0), axis=1, keepdims=True)

    # Accumulate gate-weighted contribution into the resident f32 output.
    o_ref[...] += g * y


# ---------------------------------------------------------------------------
# Host-side helpers
# ---------------------------------------------------------------------------
def _round_up(v, m):
    return ((v + m - 1) // m) * m


def prepare_expert_params(expert_params, *, eps=1e-5, lane=128):
    """Fold eval-mode BatchNorm into fc1, cast weights to bf16, pad OUT to 128.

    Done once per weight load; zero per-batch cost.
    """
    w1, b1, mean, var, gamma, beta, w2, b2 = expert_params
    scale = gamma * jax.lax.rsqrt(var + eps)                        # (E, H)
    w1f = (w1 * scale[:, None, :]).astype(jnp.bfloat16)             # (E, C, H)
    b1f = ((b1 - mean) * scale + beta)[:, None, :].astype(jnp.float32)  # (E,1,H)
    _, _, out_features = w2.shape
    out_pad = _round_up(out_features, lane)
    w2p = jnp.pad(w2, ((0, 0), (0, 0), (0, out_pad - out_features))
                  ).astype(jnp.bfloat16)                            # (E, H, OP)
    b2p = jnp.pad(b2, ((0, 0), (0, out_pad - out_features))
                  )[:, None, :].astype(jnp.float32)                 # (E, 1, OP)
    return w1f, b1f, w2p, b2p, out_features


def expert_mlp_pallas(x2d, gates, w1f, b1f, w2p, b2p, *, tb=None):
    """sum_e gates[:, e] * Expert_e(x2d)  ->  (B, OUT_pad) f32."""
    B, C = x2d.shape
    E, _, H = w1f.shape
    OUT_pad = w2p.shape[-1]

    if tb is None:
        tb = min(512, _round_up(B, 8))          # largest reasonable batch tile
    tb = max(8, _round_up(min(tb, _round_up(B, 8)), 8))
    B_pad = _round_up(B, tb)

    x_p = jnp.zeros((B_pad, C), jnp.bfloat16).at[:B].set(
        x2d.astype(jnp.bfloat16))
    g_p = jnp.zeros((B_pad, E), jnp.float32).at[:B].set(
        gates.astype(jnp.float32))

    grid = (B_pad // tb, E)

    flops = 2 * B_pad * E * (C * H + H * OUT_pad)
    bytes_accessed = (x_p.size * 2 + g_p.size * 4 + w1f.size * 2 + b1f.size * 4
                      + w2p.size * 2 + b2p.size * 4 + B_pad * OUT_pad * 4)

    out = pl.pallas_call(
        expert_moe_kernel,
        out_shape=jax.ShapeDtypeStruct((B_pad, OUT_pad), jnp.float32),
        grid_spec=pltpu.PrefetchScalarGridSpec(
            num_scalar_prefetch=0,
            grid=grid,
            in_specs=[
                pl.BlockSpec((tb, E), lambda i, e: (i, 0)),             # gates
                pl.BlockSpec((tb, C), lambda i, e: (i, 0)),             # x bf16
                pl.BlockSpec((None, C, H), lambda i, e: (e, 0, 0)),     # W1' bf16
                pl.BlockSpec((None, 1, H), lambda i, e: (e, 0, 0)),     # b1' f32
                pl.BlockSpec((None, H, OUT_pad), lambda i, e: (e, 0, 0)),  # W2 bf16
                pl.BlockSpec((None, 1, OUT_pad), lambda i, e: (e, 0, 0)),  # b2 f32
            ],
            out_specs=pl.BlockSpec((tb, OUT_pad), lambda i, e: (i, 0)),
        ),
        compiler_params=pltpu.CompilerParams(
            dimension_semantics=("parallel", "arbitrary"),
            vmem_limit_bytes=32 * 1024 * 1024),
        cost_estimate=pl.CostEstimate(
            flops=int(flops), transcendentals=0,
            bytes_accessed=int(bytes_accessed)),
    )(g_p, x_p, w1f, b1f, w2p, b2p)
    return out[:B]


def cv_squared(v, eps=1e-10):
    v = v.astype(jnp.float32)
    if v.shape[0] == 1:
        return jnp.float32(0.0)
    return jnp.var(v, ddof=1) / (jnp.mean(v) ** 2 + eps)


def top_k_gating_eval(x, w_gate, k):
    """Eval-mode noisy_top_k_gating (no noise). Returns (gates, load)."""
    logits = jnp.einsum('bchw,whce->be', x, w_gate)
    E = w_gate.shape[-1]
    top_logits, top_indices = jax.lax.top_k(logits, min(k + 1, E))
    top_k_logits = top_logits[:, :k]
    top_k_indices = top_indices[:, :k]
    top_k_gates = jax.nn.softmax(top_k_logits, axis=1)
    B = logits.shape[0]
    gates = jnp.zeros((B, E), jnp.float32)
    gates = gates.at[jnp.arange(B)[:, None], top_k_indices].set(top_k_gates)
    load = (gates > 0).sum(axis=0)
    return gates, load


def moe_forward(x, w_gate, packed_params, *, k=4, loss_coef=0.01, tb=None):
    """MoE.forward (eval): returns (y, aux_loss)."""
    B, C, Hs, Ws = x.shape
    assert Hs * Ws == 1, "reference MoE combine requires spatial size 1"
    gates, load = top_k_gating_eval(x, w_gate, k)
    importance = gates.sum(axis=0)
    loss = loss_coef * (cv_squared(importance) + cv_squared(load))

    w1f, b1f, w2p, b2p, out_features = packed_params
    x2d = x.reshape(-1, C)                         # == x.view(-1, input_channel)
    y = expert_mlp_pallas(x2d, gates, w1f, b1f, w2p, b2p, tb=tb)
    return y[:, :out_features], loss


# ---------------------------------------------------------------------------
# Pure-JAX f32 reference (dense-equivalent of dispatch/expert/combine)
# ---------------------------------------------------------------------------
def moe_ref(x, w_gate, expert_params, *, k=4, loss_coef=0.01, eps=1e-5):
    w1, b1, mean, var, gamma, beta, w2, b2 = expert_params
    gates, load = top_k_gating_eval(x, w_gate, k)
    importance = gates.sum(axis=0)
    loss = loss_coef * (cv_squared(importance) + cv_squared(load))

    x2d = x.reshape(-1, x.shape[1]).astype(jnp.float32)
    h = jnp.einsum('bc,ech->ebh', x2d, w1) + b1[:, None, :]
    h = (h - mean[:, None, :]) * jax.lax.rsqrt(var[:, None, :] + eps)
    h = h * gamma[:, None, :] + beta[:, None, :]
    h = jnp.maximum(h, 0.0)
    y_e = jnp.einsum('ebh,eho->ebo', h, w2) + b2[:, None, :]
    y = jnp.einsum('ebo,be->bo', y_e, gates)
    return y, loss


if __name__ == "__main__":
    # Small shapes consistent with the module: x is (batch, channels, H, W)
    # with H = W = 1 (required by the reference SparseDispatcher.combine).
    B, C, OUT, HID = 64, 32, 16, 64
    E, K = 8, 4
    Hs = Ws = 1

    key = jax.random.PRNGKey(0)
    ks = jax.random.split(key, 10)
    x = jax.random.normal(ks[0], (B, C, Hs, Ws), jnp.float32)
    w_gate = jax.random.normal(ks[1], (Ws, Hs, C, E), jnp.float32) * 0.1

    # Per-expert Expert2 parameters, stacked over the expert axis.
    w1 = jax.random.normal(ks[2], (E, C, HID), jnp.float32) * 0.1
    b1 = jax.random.normal(ks[3], (E, HID), jnp.float32) * 0.1
    mean = jax.random.normal(ks[4], (E, HID), jnp.float32) * 0.05
    var = jnp.abs(jax.random.normal(ks[5], (E, HID), jnp.float32)) + 0.5
    gamma = 1.0 + 0.1 * jax.random.normal(ks[6], (E, HID), jnp.float32)
    beta = 0.05 * jax.random.normal(ks[7], (E, HID), jnp.float32)
    w2 = jax.random.normal(ks[8], (E, HID, OUT), jnp.float32) * 0.1
    b2 = jax.random.normal(ks[9], (E, OUT), jnp.float32) * 0.1
    expert_params = (w1, b1, mean, var, gamma, beta, w2, b2)

    # BN folding + bf16 cast + OUT lane padding: done once per weight load.
    packed = prepare_expert_params(expert_params)

    # tb=32 -> grid = (2 parallel batch tiles, 8 expert reduction steps).
    y, loss = moe_forward(x, w_gate, packed, k=K, tb=32)
    y = jax.block_until_ready(y)

    y_ref, loss_ref = moe_ref(x, w_gate, expert_params, k=K)
    assert y.shape == (B, OUT)
    # bf16 MXU path vs f32 reference: relaxed tolerance.
    assert jnp.allclose(y, y_ref, atol=5e-2, rtol=5e-2), \
        float(jnp.max(jnp.abs(y - y_ref)))
    assert jnp.allclose(loss, loss_ref, atol=1e-5, rtol=1e-5)
    print("KERNEL_OK")
</pallas_src>

<mosaic_0001>
module attributes {stable_mosaic.version = 11 : i64} {
  func.func @expert_moe_kernel(%arg0: i32, %arg1: i32, %arg2: memref<32x8xf32, #tpu.memory_space<vmem>>, %arg3: memref<32x32xbf16, #tpu.memory_space<vmem>>, %arg4: memref<1x32x64xbf16, #tpu.memory_space<vmem>>, %arg5: memref<1x1x64xf32, #tpu.memory_space<vmem>>, %arg6: memref<1x64x128xbf16, #tpu.memory_space<vmem>>, %arg7: memref<1x1x128xf32, #tpu.memory_space<vmem>>, %arg8: memref<32x128xf32, #tpu.memory_space<vmem>>) attributes {dimension_semantics = [#tpu.dimension_semantics<parallel>, #tpu.dimension_semantics<arbitrary>], iteration_bounds = array<i64: 2, 8>, scalar_prefetch = 0 : i64, scratch_operands = 0 : i64, tpu.core_type = #tpu.core_type<tc>, window_params = [{transform_indices = @transform_0, window_bounds = array<i64: 32, 8>}, {transform_indices = @transform_1, window_bounds = array<i64: 32, 32>}, {transform_indices = @transform_2, window_bounds = array<i64: 1, 32, 64>}, {transform_indices = @transform_3, window_bounds = array<i64: 1, 1, 64>}, {transform_indices = @transform_4, window_bounds = array<i64: 1, 64, 128>}, {transform_indices = @transform_5, window_bounds = array<i64: 1, 1, 128>}, {transform_indices = @transform_6, window_bounds = array<i64: 32, 128>}]} {
    %c0_i32 = arith.constant 0 : i32
    %0 = arith.cmpi eq, %arg1, %c0_i32 : i32
    %1 = arith.extui %0 : i1 to i32
    %c0_i32_0 = arith.constant 0 : i32
    %2 = arith.cmpi ne, %1, %c0_i32_0 : i32
    scf.if %2 {
      %cst_24 = arith.constant 0.000000e+00 : f32
      %34 = vector.broadcast %cst_24 : f32 to vector<32x128xf32>
      %c0_25 = arith.constant 0 : index
      %c0_26 = arith.constant 0 : index
      %35 = vector.load %arg8[%c0_25, %c0_26] : memref<32x128xf32, #tpu.memory_space<vmem>>, vector<32x128xf32>
      tpu.vector_store %arg8[%c0_25, %c0_26], %34 {strides = array<i32>} : memref<32x128xf32, #tpu.memory_space<vmem>>, vector<32x128xf32>,
    } else {
    }
    %c0 = arith.constant 0 : index
    %c0_1 = arith.constant 0 : index
    %3 = vector.load %arg3[%c0, %c0_1] : memref<32x32xbf16, #tpu.memory_space<vmem>>, vector<32x32xbf16>
    %c0_2 = arith.constant 0 : index
    %c0_3 = arith.constant 0 : index
    %c0_4 = arith.constant 0 : index
    %4 = vector.load %arg4[%c0_2, %c0_3, %c0_4] : memref<1x32x64xbf16, #tpu.memory_space<vmem>>, vector<1x32x64xbf16>
    %5 = vector.shape_cast %4 : vector<1x32x64xbf16> to vector<32x64xbf16>
    %cst = arith.constant dense<0.000000e+00> : vector<32x64xf32>
    %6 = tpu.matmul %3, %5, %cst {dimension_numbers = #tpu.dot_dimension_numbers<[1], [0], [0], [1], [0, 0, 1, 1], [], []>} : vector<32x32xbf16>, vector<32x64xbf16>, vector<32x64xf32> -> vector<32x64xf32>
    %c0_5 = arith.constant 0 : index
    %c0_6 = arith.constant 0 : index
    %c0_7 = arith.constant 0 : index
    %7 = vector.load %arg5[%c0_5, %c0_6, %c0_7] : memref<1x1x64xf32, #tpu.memory_space<vmem>>, vector<1x1x64xf32>
    %8 = vector.shape_cast %7 : vector<1x1x64xf32> to vector<1x64xf32>
    %9 = vector.broadcast %8 : vector<1x64xf32> to vector<32x64xf32>
    %10 = arith.addf %6, %9 : vector<32x64xf32>
    %cst_8 = arith.constant 0.000000e+00 : f32
    %11 = vector.broadcast %cst_8 : f32 to vector<32x64xf32>
    %12 = arith.maximumf %10, %11 : vector<32x64xf32>
    %13 = arith.truncf %12 : vector<32x64xf32> to vector<32x64xbf16>
    %c0_9 = arith.constant 0 : index
    %c0_10 = arith.constant 0 : index
    %c0_11 = arith.constant 0 : index
    %14 = vector.load %arg6[%c0_9, %c0_10, %c0_11] : memref<1x64x128xbf16, #tpu.memory_space<vmem>>, vector<1x64x128xbf16>
    %15 = vector.shape_cast %14 : vector<1x64x128xbf16> to vector<64x128xbf16>
    %cst_12 = arith.constant dense<0.000000e+00> : vector<32x128xf32>
    %16 = tpu.matmul %13, %15, %cst_12 {dimension_numbers = #tpu.dot_dimension_numbers<[1], [0], [0], [1], [0, 0, 1, 1], [], []>} : vector<32x64xbf16>, vector<64x128xbf16>, vector<32x128xf32> -> vector<32x128xf32>
    %c0_13 = arith.constant 0 : index
    %c0_14 = arith.constant 0 : index
    %c0_15 = arith.constant 0 : index
    %17 = vector.load %arg7[%c0_13, %c0_14, %c0_15] : memref<1x1x128xf32, #tpu.memory_space<vmem>>, vector<1x1x128xf32>
    %18 = vector.shape_cast %17 : vector<1x1x128xf32> to vector<1x128xf32>
    %19 = vector.broadcast %18 : vector<1x128xf32> to vector<32x128xf32>
    %20 = arith.addf %16, %19 : vector<32x128xf32>
    %21 = tpu.iota {dimensions = array<i32: 1>} : vector<32x8xi32>
    %22 = vector.broadcast %arg1 : i32 to vector<32x8xi32>
    %23 = arith.cmpi eq, %21, %22 : vector<32x8xi32>
    %c0_16 = arith.constant 0 : index
    %c0_17 = arith.constant 0 : index
    %24 = vector.load %arg2[%c0_16, %c0_17] : memref<32x8xf32, #tpu.memory_space<vmem>>, vector<32x8xf32>
    %cst_18 = arith.constant 0.000000e+00 : f32
    %25 = vector.broadcast %cst_18 : f32 to vector<32x8xf32>
    %26 = arith.select %23, %24, %25 : vector<32x8xi1>, vector<32x8xf32>
    %cst_19 = arith.constant dense<0.000000e+00> : vector<32xf32>
    %27 = vector.multi_reduction <add>, %26, %cst_19 [1] : vector<32x8xf32> to vector<32xf32>
    %28 = vector.shape_cast %27 : vector<32xf32> to vector<32x1xf32>
    %c0_20 = arith.constant 0 : index
    %c0_21 = arith.constant 0 : index
    %29 = vector.load %arg8[%c0_20, %c0_21] : memref<32x128xf32, #tpu.memory_space<vmem>>, vector<32x128xf32>
    %30 = vector.broadcast %28 : vector<32x1xf32> to vector<32x128xf32>
    %31 = arith.mulf %30, %20 : vector<32x128xf32>
    %32 = arith.addf %29, %31 : vector<32x128xf32>
    %c0_22 = arith.constant 0 : index
    %c0_23 = arith.constant 0 : index
    %33 = vector.load %arg8[%c0_22, %c0_23] : memref<32x128xf32, #tpu.memory_space<vmem>>, vector<32x128xf32>
    tpu.vector_store %arg8[%c0_22, %c0_23], %32 {strides = array<i32>} : memref<32x128xf32, #tpu.memory_space<vmem>>, vector<32x128xf32>,
    return
  }
  func.func @transform_0(%arg0: i32, %arg1: i32) -> (i32, i32) {
    %c0_i32 = arith.constant 0 : i32
    %c0_i32_0 = arith.constant 0 : i32
    return %arg0, %c0_i32 : i32, i32
  }
  func.func @transform_1(%arg0: i32, %arg1: i32) -> (i32, i32) {
    %c0_i32 = arith.constant 0 : i32
    %c0_i32_0 = arith.constant 0 : i32
    return %arg0, %c0_i32 : i32, i32
  }
  func.func @transform_2(%arg0: i32, %arg1: i32) -> (i32, i32, i32) {
    %c0_i32 = arith.constant 0 : i32
    %c0_i32_0 = arith.constant 0 : i32
    %c0_i32_1 = arith.constant 0 : i32
    return %arg1, %c0_i32, %c0_i32_0 : i32, i32, i32
  }
  func.func @transform_3(%arg0: i32, %arg1: i32) -> (i32, i32, i32) {
    %c0_i32 = arith.constant 0 : i32
    %c0_i32_0 = arith.constant 0 : i32
    %c0_i32_1 = arith.constant 0 : i32
    return %arg1, %c0_i32, %c0_i32_0 : i32, i32, i32
  }
  func.func @transform_4(%arg0: i32, %arg1: i32) -> (i32, i32, i32) {
    %c0_i32 = arith.constant 0 : i32
    %c0_i32_0 = arith.constant 0 : i32
    %c0_i32_1 = arith.constant 0 : i32
    return %arg1, %c0_i32, %c0_i32_0 : i32, i32, i32
  }
  func.func @transform_5(%arg0: i32, %arg1: i32) -> (i32, i32, i32) {
    %c0_i32 = arith.constant 0 : i32
    %c0_i32_0 = arith.constant 0 : i32
    %c0_i32_1 = arith.constant 0 : i32
    return %arg1, %c0_i32, %c0_i32_0 : i32, i32, i32
  }
  func.func @transform_6(%arg0: i32, %arg1: i32) -> (i32, i32) {
    %c0_i32 = arith.constant 0 : i32
    %c0_i32_0 = arith.constant 0 : i32
    return %arg0, %c0_i32 : i32, i32
  }
}

</mosaic_0001>

<bundles_post_ra>
// kernel: tpu_custom_call.1
= control target key start
LH: loop header
LB: loop body
LE: loop exit
PB: predicated region body
PF: predicated region fallthrough
CT: control target
= control target key end

     0   :  { %s1508_s0 = inlined_call_operand.vmem [shape: f32[64,8], index: 0, kind: input, shape index: {}]   ;;  %s1509_s1 = inlined_call_operand.vmem [shape: bf16[64,32], index: 1, kind: input, shape index: {}]   ;;  %s1510_s2 = inlined_call_operand.hbm [shape: bf16[8,32,64], index: 2, kind: input, shape index: {}]   ;;  %s1511_s3 = inlined_call_operand.vmem [shape: f32[8,1,64], index: 3, kind: input, shape index: {}]   ;;  %s1512_s4 = inlined_call_operand.hbm [shape: bf16[8,64,128], index: 4, kind: input, shape index: {}]   ;;  %s1513_s5 = inlined_call_operand.vmem [shape: f32[8,1,128], index: 5, kind: input, shape index: {}]   ;;  %s1514_s6 = inlined_call_operand.hbm [shape: f32[64,128], index: 6, kind: output, shape index: {}]  }
   0x1   :  { %1524 = sst [smem:[#allocation21_spill]] %s1510_s2 }
   0x2   :  { %1525 = sst [smem:[#allocation22_spill]] %s1512_s4 }
   0x3   :  { %11 = vsyncpa [#allocation3], 0 }
   0x4   :  { %13 = vsyncpa [#allocation3 + $0x1], 0 }
   0x5   :  { %14 = vsyncpa [#allocation6], 0 }
   0x6   :  { %16 = vsyncpa [#allocation6 + $0x1], 0 }
   0x7   :  { %17 = vsyncpa [#allocation4], 0 }
   0x8   :  { %19 = vsyncpa [#allocation4 + $0x1], 0  ;;  %s1218_s21 = smov 0   ;;  %s1220_s22 = smov 0  }
   0x9   :  { %s1222_s23 = smov 0   ;;  %s1224_s24 = smov 0  }
   0xa   :  { %s1226_s25 = smov 0   ;;  %s1228_s26 = smov 0  }
   0xb   :  { %s1230_s27 = smov 0   ;;  %s1232_s28 = smov 0  }
   0xc   :  { %s1234_s29 = smov 0   ;;  %s1236_s30 = smov 0  }
   0xd   :  { %s1238_s7 = smov 0  }
   0xe LB: > { %1526 = sst [smem:[#allocation11_spill]] %s1133_s21  ;;  %s802_s8 = sadd.s32 4294967295, %s1173_s7   ;;  %s1173_s7 = sphi %s1238_s7, %s25_s7   ;;  %s1169_s30 = sphi %s1236_s30, %s1554_s30   ;;  %s1165_s29 = sphi %s1234_s29, %s1553_s29   ;;  %s1161_s28 = sphi %s1232_s28, %s1552_s28   ;;  %s1157_s27 = sphi %s1230_s27, %s1551_s27   ;;  %s1153_s26 = sphi %s1228_s26, %s1550_s26   ;;  %s1149_s25 = sphi %s1226_s25, %s1558_s25   ;;  %s1145_s24 = sphi %s1224_s24, %s1557_s24   ;;  %s1141_s23 = sphi %s1222_s23, %s1548_s23   ;;  %s1137_s22 = sphi %s1220_s22, %s1556_s22   ;;  %s1133_s21 = sphi %s1218_s21, %s1555_s21  }
   0xf   : > { %1527 = sst [smem:[#allocation12_spill]] %s1141_s23  ;;  %s803_s9 = sadd.s32 4294967294, %s1173_s7  }
  0x10   : > { %1528 = sst [smem:[#allocation13_spill]] %s1153_s26  ;;  %s34_s10 = sadd.s32 1, %s1165_s29 }
  0x11   : > { %1529 = sst [smem:[#allocation14_spill]] %s1165_s29  ;;  %s37_s11 = sadd.s32 1, %s1169_s30 }
  0x12   : > { %1530 = sst [smem:[#allocation15_spill]] %s1169_s30  ;;  %p35_p0 = scmp.ge.s32.totalorder %s34_s10, 8 }
  0x13   : > { %s96_s12 = sadd.s32 1, %s1153_s26  ;;  %p103_p1 = scmp.ne.s32.totalorder %s1153_s26, %s1149_s25 }
  0x14   : > { %p104_p2 = scmp.eq.s32.totalorder %s1173_s7, 0  ;;  %s1560_s10 = smov (%p35_p0, %s34_s10), 0 }
  0x15   : > { %1531 = sst [smem:[#allocation16_spill]] %s1560_s10  ;;  %s1562_s11 = smov (!%p35_p0, %s37_s11), %s1169_s30 }
  0x16   : > { %s93_s13 = ssub.s32 %s1165_s29, %s1560_s10  ;;  %p1284_p3 = por %p104_p2, %p103_p1 }
  0x17   : > { %p39_p4 = scmp.ge.s32.totalorder %s1562_s11, 2  ;;  %p94_p5 = scmp.eq.s32.totalorder %s93_s13, 0 }
  0x18   : > { %p109_p6 = scmp.ne.s32.totalorder %s1149_s25, %s1145_s24  ;;  %p110_p7 = scmp.eq.s32.totalorder %s802_s8, 0 }
  0x19   : > { %s1564_s11 = smov (%p39_p4, %s1562_s11), 0  ;;  %s200_s18 = sadd.s32 1, %s1141_s23 }
  0x1a   : > { %1533 = sst [smem:[#allocation17_spill]] %s1564_s11  ;;  %p1294_p8 = por %p110_p7, %p109_p6 }
  0x1b   : > { %s1292_s15 = scalar_select %p94_p5, %s1153_s26, %s96_s12  }
  0x1c   : > { %s197_s17 = ssub.s32 %s1169_s30, %s1564_s11  ;;  %p210_p10 = scmp.ne.s32.totalorder %s1141_s23, %s1137_s22 }
  0x1d   : > { %1534 = sst [smem:[#allocation18_spill]] %s1292_s15  ;;  %p198_p9 = scmp.eq.s32.totalorder %s197_s17, 0 }
  0x1e   : > { %p211_p11 = scmp.eq.s32.totalorder %s802_s8, 15  ;;  %p216_p13 = scmp.ne.s32.totalorder %s1137_s22, %s1133_s21 }
  0x1f   : > { %s1304_s19 = scalar_select %p198_p9, %s1141_s23, %s200_s18  }
  0x20   : > { %p1306_p12 = por %p211_p11, %p210_p10  ;;  %p217_p0 = scmp.eq.s32.totalorder %s803_s9, 15 }
  0x21   : > { %1536 = sst [smem:[#allocation19_spill]] %s1304_s19  ;;  %p890_p1 = scmp.lt.s32.totalorder %s1173_s7, 16 }
  0x22   : > { %s1314_s24 = sand.u32 1, %s1153_s26   ;;  %p1316_p2 = por %p217_p0, %p216_p13 }
  0x23   : > { %s806_s13 = sshll.u32 %s1314_s24, 4  ;;  %s840_s17 = sshll.u32 %s1165_s29, 8 }
  0x24   : > { %s1538_s12 = scalar_select %p1316_p2, 1, 0 }
  0x25   : > { %s1540_s2 = sld [smem:[#allocation21_spill]]  ;;  %s259_s10 = scalar_lea.vmem [#allocation2], %s806_s13 }
  0x26   : > { %1539 = sst [smem:[#allocation20_spill]] %s1538_s12  ;;  %s266_s30 = sshll.u32 %s259_s10, 4  ;;  %s267_s30 = int_to_ptr.vmem [resolvable:$true] %s266_s30 }
  0x27   : > { %p1327_p4 = pnand %p890_p1, %p1284_p3  ;;  %s256_s15 = scalar_lea.sflag [#allocation3], %s1314_s24 }
  0x28   : > { %s1006_s26 = scalar_lea.vmem %s267_s30, 256 }
  0x29   : > { %p995_p5 = pneg %p1327_p4  ;;  %p1007_p6 = scmp.ne.s32.totalorder %s267_s30, %s1006_s26 }
  0x2b   : > { %s265_s11 = scalar_lea.hbm %s1540_s2, %s840_s17  ;;  %p1009_p7 = pnand %p1007_p6, %p995_p5 }
  0x2c   : > { %s1175_s17 = smov [#allocation2]  }
  0x2d   : > { %p1010_p9 = pneg %p1009_p7  ;;  %s1011_s13 = sshll.u32 %s1175_s17, 4  ;;  %s1012_s13 = int_to_ptr.vmem [resolvable:$false] %s1011_s13 }
  0x2e   : > { %s1013_s10 = scalar_lea.vmem %s1012_s13, 512  ;;  %p1014_p3 = scmp.lt.s32.totalorder %s267_s30, %s1012_s13 }
  0x2f   : > { %p1015_p10 = scmp.lt.s32.totalorder %s1013_s10, %s1006_s26 }
  0x31   : > { %p1016_p11 = por %p1015_p10, %p1014_p3 }
  0x33   : > { %p1017_p13 = pnand %p1016_p11, %p1010_p9 }
  0x35   : > { %1020 = shalt.err (!%p1017_p13)
}
  0x36   : > { %s1176_s14 = smov 64   ;;  %s1177_s8 = smov 4  }
  0x37   : > { %882 = dma.hbm_to_vmem [thread:$0]  (!%p1327_p4), %s265_s11, 256, %s267_s30, %s256_s15, %s1176_s14, %s1176_s14, %s1177_s8  }
  0x38   : > { %p812_p0 = scmp.ge.s32.totalorder %s1173_s7, 1  ;;  %p307_p1 = scmp.lt.s32.totalorder %s1173_s7, 17 }
  0x39   : > { %s809_s26 = sshll.u32 %s1314_s24, 5  ;;  %s841_s17 = sshll.u32 %s1165_s29, 9 }
  0x3a   : > { %p1345_p6 = pnand %p812_p0, %p307_p1  ;;  %s286_s13 = scalar_lea.vmem [#allocation5], %s809_s26 }
  0x3b   : > { %s293_s10 = sshll.u32 %s286_s13, 4  ;;  %s1543_s4 = sld [smem:[#allocation22_spill]]  ;;  %s294_s10 = int_to_ptr.vmem [resolvable:$true] %s293_s10 }
  0x3c   : > { %s283_s12 = scalar_lea.sflag [#allocation6], %s1314_s24  ;;  %s1034_s21 = scalar_lea.vmem %s294_s10, 512 }
  0x3d   : > { %p1035_p7 = scmp.ne.s32.totalorder %s294_s10, %s1034_s21  ;;  %s1178_s30 = smov [#allocation5]  }
  0x3e   : > { %s1039_s11 = sshll.u32 %s1178_s30, 4  ;;  %s1040_s11 = int_to_ptr.vmem [resolvable:$false] %s1039_s11 }
  0x3f   : > { %p1037_p9 = pnand %p1035_p7, %p995_p5  ;;  %s1041_s15 = scalar_lea.vmem %s1040_s11, 1024 }
  0x40   : > { %p1042_p10 = scmp.lt.s32.totalorder %s294_s10, %s1040_s11  ;;  %p1043_p11 = scmp.lt.s32.totalorder %s1041_s15, %s1034_s21 }
  0x41   : > { %s292_s23 = scalar_lea.hbm %s1543_s4, %s841_s17  ;;  %p1038_p3 = pneg %p1037_p9 }
  0x42   : > { %p1044_p13 = por %p1043_p11, %p1042_p10 }
  0x44   : > { %p1045_p0 = pnand %p1044_p13, %p1038_p3 }
  0x46   : > { %1048 = shalt.err (!%p1045_p0)
}
  0x47   : > { %885 = dma.hbm_to_vmem [thread:$0]  (!%p1327_p4), %s292_s23, 512, %s294_s10, %s283_s12, %s1176_s14, %s1176_s14, %s1177_s8  }
  0x48   : > { %311 = sbr.rel (%p1345_p6) target bundleno = 531 (0x213), region = 44  ;;  %s313_s2 = sand.u32 (!%p1345_p6), 1, %s1149_s25  }
  0x49   : > { %s813_s19 = sshll.u32 (!%p1345_p6), %s313_s2, 4  ;;  %s314_s24 = scalar_lea.sflag (!%p1345_p6), [#allocation3], %s313_s2 }
  0x4a   : > { %s1365_s26 = scalar_lea.vmem (!%p1345_p6), [#allocation2], %s813_s19 }
  0x4d   : > { %1120 = dma.done.wait (%p1294_p8), %s314_s24, 256  }
  0x4e   : > { %1122 = vsyncadd (%p1294_p8), %s314_s24, 4294967040  ;;  %s814_s21 = sshll.u32 %s313_s2, 5  ;;  %s323_s9 = scalar_lea.sflag [#allocation6], %s313_s2 }
  0x4f   : > { %s1371_s17 = scalar_lea.vmem [#allocation5], %s814_s21 }
  0x50   : > { %1124 = dma.done.wait (%p1294_p8), %s323_s9, 512  }
  0x51   : > { %1126 = vsyncadd (%p1294_p8), %s323_s9, 4294966784  ;;  %s1522_s23 = sand.u32 1, %s1137_s22   ;;  %s816_s12 = sshll.u32 %s1161_s28, 2 }
  0x52   : > { %s815_s14 = sshll.u32 %s1522_s23, 5  ;;  %p377_p4 = scmp.lt.s32.totalorder %s816_s12, 7 }
  0x53   : > { %p388_p5 = scmp.lt.s32.totalorder %s1157_s27, 7  ;;  %s1401_s29 = scalar_lea.vmem [#allocation7], %s815_s14 }
  0x54   : > { %s1566_s12 = smov (!%p377_p4, %s816_s12), 7  ;;  %p820_p8 = scmp.ne.s32.totalorder %s1157_s27, 0 }
  0x55   : > { %s1383_s8 = scalar_select %p388_p5, %s1157_s27, 7 }
  0x56   : > { %s817_s18 = sshll.u32 %s1566_s12, 3  ;;  %s819_s13 = sshll.u32 %s1566_s12, 2 }
  0x57   : > { %s1388_s30 = scalar_lea.vmem %s1508_s0, %s817_s18  ;;  %s386_s2 = scalar_lea.vmem %s1509_s1, %s819_s13 }
  0x58   : > { %s390_s21 = scalar_lea.vmem %s1511_s3, %s1383_s8  ;;  %s393_s4 = scalar_lea.vmem %s1513_s5, %s1383_s8 }
  0x59   : > { %399 = sbr.rel (%p820_p8) target bundleno = 97 (0x61), region = 56 }
  0x5e   : > { %v1179_v0 = vmov 0.0  }
  0x5f   : > { %400 = vst [vmem:[%s1401_s29] sm:$0xff] %v1179_v0  ;;  %401 = vst [vmem:[%s1401_s29 + $0x8] sm:$0xff] %v1179_v0 }
  0x60   : > { %402 = vst [vmem:[%s1401_s29 + $0x10] sm:$0xff] %v1179_v0  ;;  %403 = vst [vmem:[%s1401_s29 + $0x18] sm:$0xff] %v1179_v0 }
  0x61 PF: > { %v985_v1 = vld [vmem:[%s1365_s26 + $0x8] sm:$0xff]   ;;  %v986_v2 = vld [vmem:[%s1365_s26] sm:$0xff]   ;;  %vm441_vm0 = vcmask 261120   ;;  %v598_v9 = vlaneseq  ;;  %v600_v10 = vstv %s1157_s27  ;;  %vm610_vm1 = vcmask 64512   ;;  %s653_s12 = sshll.u32 %s1401_s29, 4  ;;  %s1544_s13 = sand.u32 1, %s1137_s22   ;;  %s1442_s12 = int_to_ptr.vmem [resolvable:$true] %s653_s12 }
  0x62   : > { %853 = vmatprep.subr.bf16.mxu0 %v985_v1  ;;  %v987_v3 = vld [vmem:[%s386_s2] sm:$0xff]   ;;  %v988_v4 = vld [vmem:[%s386_s2 + $0x8] sm:$0xff]   ;;  %v989_v5 = vld [vmem:[%s1371_s17 + $0x18] sm:$0xff]   ;;  %vm542_vm3 = vcmask 523264   ;;  %s1049_s16 = scalar_lea.vmem %s1442_s12, 512  ;;  %s1180_s10 = smov [#allocation7]  }
  0x63   : > { %854 = vmatpush3.bf16.msra.mxu0 %v985_v1  ;;  %857 = vmatprep.mubr.msk.bf16.mxu0 %vm441_vm0, %v987_v3  ;;  %v990_v6 = vld [vmem:[%s1371_s17 + $0x10] sm:$0xff]   ;;  %v991_v7 = vld [vmem:[%s1371_s17 + $0x8] sm:$0xff]   ;;  %v992_v8 = vld [vmem:[%s1371_s17] sm:$0xff]   ;;  %v599_v12 = vand.u32 127, %v598_v9  ;;  %p1050_p1 = scmp.ne.s32.totalorder %s1442_s12, %s1049_s16 }
  0x64   : > { %855 = vmatprep.subr.bf16.mxu0 %v986_v2  ;;  %861 = vmatprep.subr.bf16.mxu1 %v989_v5  ;;  %v604_v11 = vld [vmem:[%s1388_s30 + $0x10] sm:$0xff]  ;;  %v602_v13 = vld [vmem:[%s1388_s30] sm:$0xff]  ;;  %v605_v14 = vld [vmem:[%s1388_s30 + $0x18] sm:$0xff] }
  0x65   : > { %862 = vmatpush3.bf16.msra.mxu1 %v989_v5  ;;  %v603_v15 = vld [vmem:[%s1388_s30 + $0x8] sm:$0xff]  ;;  %vm601_vm2 = vcmp.eq.s32.totalorder %v599_v12, %v600_v10  ;;  %v821_v26 = vld [vmem:[%s390_s21] ss:$0 sm:$0xff]  ;;  %p1051_p6 = pnand %p1050_p1, %p1306_p12  ;;  %s1053_s30 = sshll.u32 %s1180_s10, 4  ;;  %s1054_s30 = int_to_ptr.vmem [resolvable:$false] %s1053_s30 }
  0x66   : > { %863 = vmatprep.subr.bf16.mxu1 %v990_v6  ;;  %v608_v16 = vsel %vm601_vm2, %v604_v11, 0.0  ;;  %v606_v17 = vsel %vm601_vm2, %v602_v13, 0.0  ;;  %v609_v18 = vsel %vm601_vm2, %v605_v14, 0.0  ;;  %v607_v19 = vsel %vm601_vm2, %v603_v15, 0.0  ;;  %v828_v39 = vld [vmem:[%s393_s4] ss:$0 sm:$0xff]  ;;  %p1056_p9 = scmp.lt.s32.totalorder %s1442_s12, %s1054_s30 }
  0x67   : > { %856 = vmatpush3.bf16.msra.mxu0 %v986_v2  ;;  %v617_v20 = vsel %vm610_vm1, %v608_v16, 0.0  ;;  %v611_v21 = vsel %vm610_vm1, %v606_v17, 0.0  ;;  %v620_v22 = vsel %vm610_vm1, %v609_v18, 0.0  ;;  %v614_v23 = vsel %vm610_vm1, %v607_v19, 0.0  ;;  %v625_v44 = vld [vmem:[%s1401_s29 + $0x10] sm:$0xff]  ;;  %v623_v48 = vld [vmem:[%s1401_s29] sm:$0xff]  ;;  %p1052_p7 = pneg %p1051_p6 }
  0x68   : > { %618 = vadd.xlane.f32.xlu1 %v617_v20  ;;  %612 = vadd.xlane.f32.xlu0 %v611_v21  ;;  %v626_v54 = vld [vmem:[%s1401_s29 + $0x18] sm:$0xff]  ;;  %s842_s4 = sshll.u32 %s1161_s28, 9  ;;  %v624_v60 = vld [vmem:[%s1401_s29 + $0x8] sm:$0xff]  ;;  %s1448_s28 = scalar_lea.sflag [#allocation4], %s1544_s13 }
  0x69   : > { %864 = vmatpush3.bf16.msra.mxu1 %v990_v6  ;;  %s1440_s18 = scalar_lea.hbm %s1514_s6, %s842_s4  ;;  %s1055_s11 = scalar_lea.vmem %s1054_s30, 1024 }
  0x6a   : > { %858 = vmatmul.mubr.msk.bf16.vlgmr.msra.gmra.mxu0 %vm441_vm0, %v988_v4  ;;  %865 = vmatprep.subr.bf16.mxu1 %v991_v7  ;;  %p1057_p3 = scmp.lt.s32.totalorder %s1055_s11, %s1049_s16 }
  0x6c   : > { %621 = vadd.xlane.f32.xlu1 %v620_v22  ;;  %615 = vadd.xlane.f32.xlu0 %v614_v23  ;;  %p1058_p10 = por %p1057_p3, %p1056_p9 }
  0x6d   : > { %866 = vmatpush3.bf16.msra.mxu1 %v991_v7 }
  0x6e   : > { %867 = vmatprep.subr.bf16.mxu1 %v992_v8  ;;  %p1059_p11 = pnand %p1058_p10, %p1052_p7 }
  0x71   : > { %868 = vmatpush3.bf16.msra.mxu1 %v992_v8 }
  0xf1   : > { %v619_v40 = vpop.xlane.xlu1 %618  ;;  %v613_v42 = vpop.xlane.xlu0 %612 }
  0xf5   : > { %v622_v50 = vpop.xlane.xlu1 %621  ;;  %v616_v56 = vpop.xlane.xlu0 %615 }
 0x12a   : > { %v859_v24 = vpop.f32.mrf.mxu0 }
 0x12b   : > { %v491_v30 = vadd.f32 %v859_v24, %v821_v26 }
 0x12c   : > { %v482_v25 = vpop.f32.mrf.mxu0 }
 0x12d   : > { %v483_v28 = vadd.f32 %v821_v26, %v482_v25  ;;  %v499_v36 = vmax.f32 %v491_v30, 0.0 }
 0x12e   : > { %v860_v27 = vpop.f32.mrf.mxu0 }
 0x12f   : > { %v494_v29 = vadd.f32 %v860_v27, %v821_v26  ;;  %v497_v34 = vmax.f32 %v483_v28, 0.0 }
 0x130   : > { %v485_v31 = vpop.f32.mrf.mxu0 }
 0x131   : > { %v486_v32 = vadd.f32 %v821_v26, %v485_v31  ;;  %v500_v33 = vmax.f32 %v494_v29, 0.0 }
 0x133   : > { %v498_v35 = vmax.f32 %v486_v32, 0.0  ;;  %v502_v38 = vpack.c.bf16 %v500_v33, %v499_v36 }
 0x135   : > { %v501_v37 = vpack.c.bf16 %v498_v35, %v497_v34 }
 0x137   : > { %869 = vmatprep.mubr.msk.bf16.mxu1 %vm542_vm3, %v501_v37 }
 0x138   : > { %870 = vmatmul.mubr.msk.bf16.vlgmr.msra.gmra.mxu1 %vm542_vm3, %v502_v38 }
 0x1f8   : > { %v871_v41 = vpop.f32.mrf.mxu1 }
 0x1f9   : > { %v592_v43 = vadd.f32 %v871_v41, %v828_v39 }
 0x1fa   : > { %v583_v45 = vpop.f32.mrf.mxu1 }
 0x1fb   : > { %v629_v46 = vmul.f32 %v619_v40, %v592_v43  ;;  %v584_v47 = vadd.f32 %v828_v39, %v583_v45 }
 0x1fc   : > { %v872_v49 = vpop.f32.mrf.mxu1 }
 0x1fd   : > { %v633_v51 = vadd.f32 %v629_v46, %v625_v44  ;;  %v627_v52 = vmul.f32 %v613_v42, %v584_v47  ;;  %v595_v53 = vadd.f32 %v872_v49, %v828_v39 }
 0x1fe   : > { %v586_v55 = vpop.f32.mrf.mxu1 }
 0x1ff   : > { %637 = vst [vmem:[%s1401_s29 + $0x10] sm:$0xff] %v633_v51  ;;  %v631_v57 = vadd.f32 %v627_v52, %v623_v48  ;;  %v630_v58 = vmul.f32 %v622_v50, %v595_v53  ;;  %v587_v59 = vadd.f32 %v828_v39, %v586_v55 }
 0x201   : > { %635 = vst [vmem:[%s1401_s29] sm:$0xff] %v631_v57  ;;  %v634_v61 = vadd.f32 %v630_v58, %v626_v54  ;;  %v628_v62 = vmul.f32 %v616_v56, %v587_v59 }
 0x203   : > { %638 = vst [vmem:[%s1401_s29 + $0x18] sm:$0xff] %v634_v61  ;;  %v632_v63 = vadd.f32 %v628_v62, %v624_v60 }
 0x205   : > { %636 = vst [vmem:[%s1401_s29 + $0x8] sm:$0xff] %v632_v63 }
 0x206   : > { %1062 = shalt.err (!%p1059_p11)
}
 0x207   : > { %s1063_s29 = scalar_lea.hbm %s1440_s18, 512  ;;  %s1067_s19 = scalar_lea.hbm %s1514_s6, 1024 }
 0x208   : > { %p1064_p13 = scmp.ne.s32.totalorder %s1440_s18, %s1063_s29  ;;  %p1068_p5 = scmp.lt.s32.totalorder %s1440_s18, %s1514_s6 }
 0x209   : > { %p1069_p8 = scmp.lt.s32.totalorder %s1067_s19, %s1063_s29 }
 0x20a   : > { %p1065_p0 = pnand %p1064_p13, %p1306_p12 }
 0x20b   : > { %p1070_p1 = por %p1069_p8, %p1068_p5 }
 0x20c   : > { %p1066_p4 = pneg %p1065_p0 }
 0x20e   : > { %p1071_p6 = pnand %p1070_p1, %p1066_p4 }
 0x210   : > { %1074 = shalt.err (!%p1071_p6)
}
 0x211   : > { %s1181_s9 = smov 128   ;;  %s1182_s27 = smov 8  }
 0x212   : > { %877 = dma.vmem_to_hbm [thread:$0]  (%p1306_p12), %s1442_s12, 512, %s1440_s18, %s1448_s28, %s1181_s9, %s1181_s9, %s1182_s27  }
 0x213 PF: > { %s1545_s26 = sld [smem:[#allocation11_spill]]  ;;  %p891_p7 = scmp.ge.s32.totalorder %s1173_s7, 2 }
 0x215   : > { %p887_p9 = pnand %p891_p7, %p1316_p2 }
 0x217   : > { %p888_p3 = pneg %p887_p9 }
 0x219   : > { %s668_s23 = sand.u32 1, %s1545_s26  }
 0x21a   : > { %s669_s4 = scalar_lea.sflag [#allocation4], %s668_s23 }
 0x21b   : > { %1128 = dma.done.wait (%p888_p3), %s669_s4, 512  }
 0x21c   : > { %1130 = vsyncadd (%p888_p3), %s669_s4, 4294966784  ;;  %s25_s7 = sadd.s32 1, %s1173_s7   ;;  %s1547_s14 = sld [smem:[#allocation12_spill]] }
 0x21d   : > { %p22_p10 = scmp.ge.s32.totalorder %s25_s7, 18   ;;  %s1548_s23 = sld [smem:[#allocation19_spill]] }
 0x21e   : > { %s1549_s20 = sld [smem:[#allocation13_spill]]  ;;  %s1555_s21 = smov %s1137_s22 }
 0x21f   : > { %s1550_s26 = sld [smem:[#allocation18_spill]]  ;;  %s1557_s24 = smov %s1149_s25 }
 0x220   : > { %s1551_s27 = sld [smem:[#allocation14_spill]]  ;;  %24 = sbr.rel (!%p22_p10) target bundleno = 14 (0xe), region = 118 }
 0x221   : > { %s1552_s28 = sld [smem:[#allocation15_spill]] }
 0x222   : > { %s1553_s29 = sld [smem:[#allocation16_spill]]  ;;  %s1556_s22 = smov %s1547_s14 }
 0x223   : > { %s1554_s30 = sld [smem:[#allocation17_spill]] }
 0x224   : > { %s1558_s25 = smov %s1549_s20 }
 0x225   :  { %674 = vsyncpa [#allocation3], 1 }
 0x226   :  { %676 = vsyncpa [#allocation3 + $0x1], 1 }
 0x227   :  { %677 = vsyncpa [#allocation6], 1 }
 0x228   :  { %679 = vsyncpa [#allocation6 + $0x1], 1 }
 0x229   :  { %680 = vsyncpa [#allocation4], 1 }
 0x22a   :  { %682 = vsyncpa [#allocation4 + $0x1], 1 }

</bundles_post_ra>
